<compile_context>
chip_gen: v7x
topology: tpu7x:2x2x1
jax: 0.10.0
libtpu: 0.0.40
codegen_flags: <defaults>
</compile_context>

<pallas_src>
import jax
import jax.numpy as jnp
from jax import lax
from jax.experimental import pallas as pl
from jax.experimental.pallas import tpu as pltpu
import numpy as np

HIDDEN = 2            # LSTM hidden size
INPUT = 1             # LSTM input size
GATES = 4 * HIDDEN    # 8 gate rows: [i, i, f, f, g, g, o, o]
UNROLL = 8            # time steps per unrolled group (= one sublane tile)


def _lstm_linear_kernel(x_ref, p_ref, out_ref, h0_scr, h1_scr, c_scr):
    """One grid step processes a (T_BLK, B_BLK) tile of the sequence.

    x_ref   : (T_BLK, B_BLK) f32   input, time on sublanes, batch on lanes
    p_ref   : (8, 8)         f32   packed parameters (see _pack_params)
    out_ref : (T_BLK, B_BLK) f32   per-step linear outputs
    h0_scr  : (8, B_BLK)     f32   h[0] sublane-replicated, carried across time tiles
    h1_scr  : (8, B_BLK)     f32   h[1] sublane-replicated, carried across time tiles
    c_scr   : (2, B_BLK)     f32   cell state,              carried across time tiles
    """
    H = HIDDEN
    t_blk, b_blk = x_ref.shape
    n_groups = t_blk // UNROLL

    # New sequence block (first time tile of this batch block): zero-init the
    # carried state (PyTorch default h0 = c0 = 0).  Relies on the time axis
    # being the LAST ("arbitrary") grid axis -- see guard comment at top.
    @pl.when(pl.program_id(1) == 0)
    def _():
        h0_scr[...] = jnp.zeros_like(h0_scr)
        h1_scr[...] = jnp.zeros_like(h1_scr)
        c_scr[...] = jnp.zeros_like(c_scr)

    p = p_ref[...]                                                # (8, 8)
    # Hoisted lane-broadcast parameter planes.
    wih_b    = jnp.broadcast_to(p[:, 0:1], (GATES, b_blk))  # 0.5-prescaled W_ih
    whh0_b   = jnp.broadcast_to(p[:, 1:2], (GATES, b_blk))  # 0.5-prescaled W_hh[:, 0]
    whh1_b   = jnp.broadcast_to(p[:, 2:3], (GATES, b_blk))  # 0.5-prescaled W_hh[:, 1]
    bias_b   = jnp.broadcast_to(p[:, 3:4], (GATES, b_blk))  # 0.5-prescaled (b_ih + b_hh)
    pscale_b = jnp.broadcast_to(p[:, 4:5], (GATES, b_blk))  # 0.5 (i,f,o) / 1.0 (g)
    pshift_b = jnp.broadcast_to(p[:, 5:6], (GATES, b_blk))  # 0.5 (i,f,o) / 0.0 (g)
    wlin0_b  = jnp.broadcast_to(p[0:1, 6:7], (1, b_blk))    # linear.weight[0, 0]
    wlin1_b  = jnp.broadcast_to(p[1:2, 6:7], (1, b_blk))    # linear.weight[0, 1]
    blin_b   = jnp.broadcast_to(p[2:3, 6:7], (1, b_blk))    # linear.bias[0]

    def group_body(grp, carry):
        h0_rep, h1_rep, c = carry                  # (8,B), (8,B), (2,B) in vregs
        t0 = pl.multiple_of(grp * UNROLL, UNROLL)
        x_grp = x_ref[pl.ds(t0, UNROLL), :]        # (8, B) aligned tile load
        ys = []

        for u in range(UNROLL):
            # Input projection: independent of h/c -> off the critical path.
            pre = wih_b * x_grp[u:u + 1, :] + bias_b                  # (8, B)
            # Recurrent term uses pre-replicated h planes (no sublane
            # broadcast on the serial chain).
            z = pre + whh0_b * h0_rep + whh1_b * h1_rep               # (8, B)
            # Single full-width transcendental for all four gates:
            #   sigmoid(x) = 0.5 * tanh(x / 2) + 0.5 (x/2 folded into weights).
            th = jnp.tanh(z)                                          # (8, B) EUP
            act = th * pscale_b + pshift_b                            # (8, B)

            i_g = act[0 * H:1 * H, :]        # input gate   (sigmoid)
            f_g = act[1 * H:2 * H, :]        # forget gate  (sigmoid)
            g_g = act[2 * H:3 * H, :]        # cell cand.   (tanh)
            o_g = act[3 * H:4 * H, :]        # output gate  (sigmoid)

            c = f_g * c + i_g * g_g                                   # (2, B)
            h = o_g * jnp.tanh(c)                                     # (2, B)

            # Issue the sublane broadcasts for the NEXT step right after h is
            # produced; the XLU hop overlaps with the off-chain y compute.
            h0_rep = jnp.broadcast_to(h[0:1, :], (GATES, b_blk))      # (8, B)
            h1_rep = jnp.broadcast_to(h[1:2, :], (GATES, b_blk))      # (8, B)

            # y_t = Linear(h_t)   (off the recurrence chain)
            y = wlin0_b * h[0:1, :] + wlin1_b * h[1:2, :] + blin_b    # (1, B)
            ys.append(y)

        # One aligned (UNROLL, B) store per group instead of 8 masked
        # single-sublane stores.
        out_ref[pl.ds(t0, UNROLL), :] = jnp.concatenate(ys, axis=0)
        return h0_rep, h1_rep, c

    init = (h0_scr[...], h1_scr[...], c_scr[...])
    h0_rep, h1_rep, c = lax.fori_loop(0, n_groups, group_body, init)

    # Persist state once per grid step (only needed across time tiles).
    h0_scr[...] = h0_rep
    h1_scr[...] = h1_rep
    c_scr[...] = c


def _pack_params(params):
    """Pack LSTM + Linear parameters into one (8, 8) f32 array.

    col 0: W_ih[:, 0] * s      col 4: post_scale (0.5 i/f/o, 1.0 g)
    col 1: W_hh[:, 0] * s      col 5: post_shift (0.5 i/f/o, 0.0 g)
    col 2: W_hh[:, 1] * s      col 6: rows 0,1 = linear.weight; row 2 = linear.bias
    col 3: (b_ih + b_hh) * s   col 7: unused
    where s = 0.5 for sigmoid rows (i, f, o) and 1.0 for tanh rows (g),
    folding sigmoid(x) = 0.5*tanh(x/2) + 0.5 into the weights.
    """
    wih = params["weight_ih_l0"].astype(jnp.float32)                     # (8, 1)
    whh = params["weight_hh_l0"].astype(jnp.float32)                     # (8, 2)
    bias = (params["bias_ih_l0"] + params["bias_hh_l0"]).astype(jnp.float32)  # (8,)
    wlin = params["linear_weight"].astype(jnp.float32)                   # (1, 2)
    blin = params["linear_bias"].astype(jnp.float32)                     # (1,)

    is_g = (jnp.arange(GATES) // HIDDEN) == 2          # rows 4, 5 -> g gate
    pre_scale = jnp.where(is_g, 1.0, 0.5).astype(jnp.float32)
    post_scale = jnp.where(is_g, 1.0, 0.5).astype(jnp.float32)
    post_shift = jnp.where(is_g, 0.0, 0.5).astype(jnp.float32)

    packed = jnp.zeros((GATES, 8), jnp.float32)
    packed = packed.at[:, 0].set(wih[:, 0] * pre_scale)
    packed = packed.at[:, 1].set(whh[:, 0] * pre_scale)
    packed = packed.at[:, 2].set(whh[:, 1] * pre_scale)
    packed = packed.at[:, 3].set(bias * pre_scale)
    packed = packed.at[:, 4].set(post_scale)
    packed = packed.at[:, 5].set(post_shift)
    packed = packed.at[0, 6].set(wlin[0, 0])
    packed = packed.at[1, 6].set(wlin[0, 1])
    packed = packed.at[2, 6].set(blin[0])
    return packed


def _round_up(n, m):
    return ((n + m - 1) // m) * m


def air_model_forward(x, params, *, b_block=256, t_block=512, min_batch_blocks=1):
    """x: (B, T, 1) float32  ->  (B, T, 1) float32 (matches PyTorch AirModel).

    b_block           : lanes per batch tile (multiple of 128).  256 gives two
                        independent lane tiles per step to hide recurrence
                        latency; stop widening once VALU issue saturates
                        (earlier on v5e/v6e than on v7x).
    t_block           : time steps per grid tile (multiple of UNROLL).
    min_batch_blocks  : set to 2 on v7x (2 TensorCores/chip) so the "parallel"
                        batch axis shards across both cores when B permits.
    """
    B, T, _ = x.shape
    x = x.astype(jnp.float32)

    # --- batch tiling: lane-dense, optionally >= min_batch_blocks blocks ---
    b_req = _round_up(B, 128)                       # minimal lane-dense padding
    b_block = max(128, min(_round_up(b_block, 128), b_req))
    if min_batch_blocks > 1:
        while b_block > 128 and b_req // b_block < min_batch_blocks:
            b_block -= 128
    b_pad = _round_up(B, b_block)

    # --- time tiling: multiple of the unroll factor ---
    t_blk = min(_round_up(t_block, UNROLL), _round_up(T, UNROLL))
    t_pad = _round_up(T, t_blk)

    assert b_block % 128 == 0 and b_pad % b_block == 0
    assert t_blk % UNROLL == 0 and t_pad % t_blk == 0

    # (B, T, 1) -> (T_pad, B_pad), time-major, batch on the lane axis.
    x_tb = jnp.transpose(x[..., 0], (1, 0))
    x_tb = jnp.pad(x_tb, ((0, t_pad - T), (0, b_pad - B)))

    packed = _pack_params(params)

    # GUARD: grid MUST stay (batch, time) with time last & "arbitrary" -- the
    # h/c scratch carry and its program_id(1)==0 reset depend on it.
    grid = (b_pad // b_block, t_pad // t_blk)

    out_tb = pl.pallas_call(
        _lstm_linear_kernel,
        out_shape=jax.ShapeDtypeStruct((t_pad, b_pad), jnp.float32),
        grid=grid,
        in_specs=[
            pl.BlockSpec((t_blk, b_block), lambda bi, ti: (ti, bi)),
            pl.BlockSpec((GATES, 8), lambda bi, ti: (0, 0)),
        ],
        out_specs=pl.BlockSpec((t_blk, b_block), lambda bi, ti: (ti, bi)),
        scratch_shapes=[
            pltpu.VMEM((GATES, b_block), jnp.float32),    # h[0] replicated
            pltpu.VMEM((GATES, b_block), jnp.float32),    # h[1] replicated
            pltpu.VMEM((HIDDEN, b_block), jnp.float32),   # c
        ],
        compiler_params=pltpu.CompilerParams(
            dimension_semantics=("parallel", "arbitrary")),
    )(x_tb, packed)

    return jnp.transpose(out_tb[:T, :B], (1, 0))[..., None]   # (B, T, 1)


def reference_forward(x, params):
    """Pure-JAX reference of the PyTorch forward (for correctness check)."""
    B, T, _ = x.shape
    wih = params["weight_ih_l0"]                          # (8, 1)
    whh = params["weight_hh_l0"]                          # (8, 2)
    bias = params["bias_ih_l0"] + params["bias_hh_l0"]    # (8,)
    wlin = params["linear_weight"]                        # (1, 2)
    blin = params["linear_bias"]                          # (1,)

    def step(carry, x_t):                 # x_t: (B, 1)
        h, c = carry                      # (B, H)
        gates = x_t @ wih.T + h @ whh.T + bias            # (B, 8)
        i = jax.nn.sigmoid(gates[:, 0:2])
        f = jax.nn.sigmoid(gates[:, 2:4])
        g = jnp.tanh(gates[:, 4:6])
        o = jax.nn.sigmoid(gates[:, 6:8])
        c = f * c + i * g
        h = o * jnp.tanh(c)
        y = h @ wlin.T + blin             # (B, 1)
        return (h, c), y

    h0 = jnp.zeros((B, HIDDEN), jnp.float32)
    c0 = jnp.zeros((B, HIDDEN), jnp.float32)
    _, ys = lax.scan(step, (h0, c0), jnp.transpose(x, (1, 0, 2)))   # (T, B, 1)
    return jnp.transpose(ys, (1, 0, 2))


def init_params(key):
    """Deterministic synthetic parameters with PyTorch AirModel shapes."""
    ks = jax.random.split(key, 6)
    u = lambda k, shape: jax.random.uniform(k, shape, jnp.float32, -0.5, 0.5)
    return {
        "weight_ih_l0": u(ks[0], (4 * HIDDEN, INPUT)),
        "weight_hh_l0": u(ks[1], (4 * HIDDEN, HIDDEN)),
        "bias_ih_l0": u(ks[2], (4 * HIDDEN,)),
        "bias_hh_l0": u(ks[3], (4 * HIDDEN,)),
        "linear_weight": u(ks[4], (1, HIDDEN)),
        "linear_bias": u(ks[5], (1,)),
    }


if __name__ == "__main__":
    key = jax.random.PRNGKey(0)
    pkey, xkey = jax.random.split(key)

    params = init_params(pkey)

    B, T = 2, 8
    x = jax.random.normal(xkey, (B, T, INPUT), jnp.float32)

    out = jax.block_until_ready(air_model_forward(x, params))
    ref = jax.block_until_ready(reference_forward(x, params))

    assert out.shape == (B, T, 1), out.shape
    np.testing.assert_allclose(np.asarray(out), np.asarray(ref),
                               rtol=1e-5, atol=1e-5)
    print("KERNEL_OK")
</pallas_src>

<mosaic_0001>
module attributes {stable_mosaic.version = 11 : i64} {
  func.func @_lstm_linear_kernel(%arg0: i32, %arg1: i32, %arg2: memref<8x128xf32, #tpu.memory_space<vmem>>, %arg3: memref<8x8xf32, #tpu.memory_space<vmem>>, %arg4: memref<8x128xf32, #tpu.memory_space<vmem>>, %arg5: memref<8x128xf32, #tpu.memory_space<vmem>>, %arg6: memref<8x128xf32, #tpu.memory_space<vmem>>, %arg7: memref<2x128xf32, #tpu.memory_space<vmem>>) attributes {dimension_semantics = [#tpu.dimension_semantics<parallel>, #tpu.dimension_semantics<arbitrary>], iteration_bounds = array<i64: 1, 1>, scalar_prefetch = 0 : i64, scratch_operands = 3 : i64, tpu.core_type = #tpu.core_type<tc>, window_params = [{transform_indices = @transform_0, window_bounds = array<i64: 8, 128>}, {pipeline_mode = #tpu.pipeline_mode<synchronous>, transform_indices = @transform_1, window_bounds = array<i64: 8, 8>}, {transform_indices = @transform_2, window_bounds = array<i64: 8, 128>}]} {
    %c0_i32 = arith.constant 0 : i32
    %0 = arith.cmpi eq, %arg1, %c0_i32 : i32
    %1 = arith.extui %0 : i1 to i32
    %c0_i32_0 = arith.constant 0 : i32
    %2 = arith.cmpi ne, %1, %c0_i32_0 : i32
    scf.if %2 {
      %cst = arith.constant 0.000000e+00 : f32
      %300 = vector.broadcast %cst : f32 to vector<8x128xf32>
      %c0_17 = arith.constant 0 : index
      %c0_18 = arith.constant 0 : index
      %301 = vector.load %arg5[%c0_17, %c0_18] : memref<8x128xf32, #tpu.memory_space<vmem>>, vector<8x128xf32>
      tpu.vector_store %arg5[%c0_17, %c0_18], %300 {strides = array<i32>} : memref<8x128xf32, #tpu.memory_space<vmem>>, vector<8x128xf32>,
      %cst_19 = arith.constant 0.000000e+00 : f32
      %302 = vector.broadcast %cst_19 : f32 to vector<8x128xf32>
      %c0_20 = arith.constant 0 : index
      %c0_21 = arith.constant 0 : index
      %303 = vector.load %arg6[%c0_20, %c0_21] : memref<8x128xf32, #tpu.memory_space<vmem>>, vector<8x128xf32>
      tpu.vector_store %arg6[%c0_20, %c0_21], %302 {strides = array<i32>} : memref<8x128xf32, #tpu.memory_space<vmem>>, vector<8x128xf32>,
      %cst_22 = arith.constant 0.000000e+00 : f32
      %304 = vector.broadcast %cst_22 : f32 to vector<2x128xf32>
      %c0_23 = arith.constant 0 : index
      %c0_24 = arith.constant 0 : index
      %305 = vector.load %arg7[%c0_23, %c0_24] : memref<2x128xf32, #tpu.memory_space<vmem>>, vector<2x128xf32>
      tpu.vector_store %arg7[%c0_23, %c0_24], %304 {strides = array<i32>} : memref<2x128xf32, #tpu.memory_space<vmem>>, vector<2x128xf32>,
    } else {
    }
    %c0 = arith.constant 0 : index
    %c0_1 = arith.constant 0 : index
    %3 = vector.load %arg3[%c0, %c0_1] : memref<8x8xf32, #tpu.memory_space<vmem>>, vector<8x8xf32>
    %4 = vector.extract_strided_slice %3 {offsets = [0, 0], sizes = [8, 1], strides = [1, 1]} : vector<8x8xf32> to vector<8x1xf32>
    %5 = vector.shape_cast %4 : vector<8x1xf32> to vector<8x1xf32>
    %6 = vector.broadcast %5 : vector<8x1xf32> to vector<8x128xf32>
    %7 = vector.extract_strided_slice %3 {offsets = [0, 1], sizes = [8, 1], strides = [1, 1]} : vector<8x8xf32> to vector<8x1xf32>
    %8 = vector.shape_cast %7 : vector<8x1xf32> to vector<8x1xf32>
    %9 = vector.broadcast %8 : vector<8x1xf32> to vector<8x128xf32>
    %10 = vector.extract_strided_slice %3 {offsets = [0, 2], sizes = [8, 1], strides = [1, 1]} : vector<8x8xf32> to vector<8x1xf32>
    %11 = vector.shape_cast %10 : vector<8x1xf32> to vector<8x1xf32>
    %12 = vector.broadcast %11 : vector<8x1xf32> to vector<8x128xf32>
    %13 = vector.extract_strided_slice %3 {offsets = [0, 3], sizes = [8, 1], strides = [1, 1]} : vector<8x8xf32> to vector<8x1xf32>
    %14 = vector.shape_cast %13 : vector<8x1xf32> to vector<8x1xf32>
    %15 = vector.broadcast %14 : vector<8x1xf32> to vector<8x128xf32>
    %16 = vector.extract_strided_slice %3 {offsets = [0, 4], sizes = [8, 1], strides = [1, 1]} : vector<8x8xf32> to vector<8x1xf32>
    %17 = vector.shape_cast %16 : vector<8x1xf32> to vector<8x1xf32>
    %18 = vector.broadcast %17 : vector<8x1xf32> to vector<8x128xf32>
    %19 = vector.extract_strided_slice %3 {offsets = [0, 5], sizes = [8, 1], strides = [1, 1]} : vector<8x8xf32> to vector<8x1xf32>
    %20 = vector.shape_cast %19 : vector<8x1xf32> to vector<8x1xf32>
    %21 = vector.broadcast %20 : vector<8x1xf32> to vector<8x128xf32>
    %22 = vector.extract_strided_slice %3 {offsets = [0, 6], sizes = [1, 1], strides = [1, 1]} : vector<8x8xf32> to vector<1x1xf32>
    %23 = vector.shape_cast %22 : vector<1x1xf32> to vector<1x1xf32>
    %24 = vector.broadcast %23 : vector<1x1xf32> to vector<1x128xf32>
    %25 = vector.extract_strided_slice %3 {offsets = [1, 6], sizes = [1, 1], strides = [1, 1]} : vector<8x8xf32> to vector<1x1xf32>
    %26 = vector.shape_cast %25 : vector<1x1xf32> to vector<1x1xf32>
    %27 = vector.broadcast %26 : vector<1x1xf32> to vector<1x128xf32>
    %28 = vector.extract_strided_slice %3 {offsets = [2, 6], sizes = [1, 1], strides = [1, 1]} : vector<8x8xf32> to vector<1x1xf32>
    %29 = vector.shape_cast %28 : vector<1x1xf32> to vector<1x1xf32>
    %30 = vector.broadcast %29 : vector<1x1xf32> to vector<1x128xf32>
    %c0_2 = arith.constant 0 : index
    %c0_3 = arith.constant 0 : index
    %31 = vector.load %arg5[%c0_2, %c0_3] : memref<8x128xf32, #tpu.memory_space<vmem>>, vector<8x128xf32>
    %c0_4 = arith.constant 0 : index
    %c0_5 = arith.constant 0 : index
    %32 = vector.load %arg6[%c0_4, %c0_5] : memref<8x128xf32, #tpu.memory_space<vmem>>, vector<8x128xf32>
    %c0_6 = arith.constant 0 : index
    %c0_7 = arith.constant 0 : index
    %33 = vector.load %arg7[%c0_6, %c0_7] : memref<2x128xf32, #tpu.memory_space<vmem>>, vector<2x128xf32>
    %c0_i32_8 = arith.constant 0 : i32
    %c8_i32 = arith.constant 8 : i32
    %34 = arith.muli %c0_i32_8, %c8_i32 : i32
    %35 = tpu.assume_multiple %34, 8 : i32
    %36 = arith.index_cast %35 : i32 to index
    %c0_9 = arith.constant 0 : index
    %37 = vector.load %arg2[%36, %c0_9] : memref<8x128xf32, #tpu.memory_space<vmem>>, vector<8x128xf32>
    %38 = vector.extract_strided_slice %37 {offsets = [0, 0], sizes = [1, 128], strides = [1, 1]} : vector<8x128xf32> to vector<1x128xf32>
    %39 = vector.broadcast %38 : vector<1x128xf32> to vector<8x128xf32>
    %40 = arith.mulf %6, %39 : vector<8x128xf32>
    %41 = arith.addf %40, %15 : vector<8x128xf32>
    %42 = arith.mulf %9, %31 : vector<8x128xf32>
    %43 = arith.addf %41, %42 : vector<8x128xf32>
    %44 = arith.mulf %12, %32 : vector<8x128xf32>
    %45 = arith.addf %43, %44 : vector<8x128xf32>
    %46 = math.tanh %45 : vector<8x128xf32>
    %47 = arith.mulf %46, %18 : vector<8x128xf32>
    %48 = arith.addf %47, %21 : vector<8x128xf32>
    %49 = vector.extract_strided_slice %48 {offsets = [0, 0], sizes = [2, 128], strides = [1, 1]} : vector<8x128xf32> to vector<2x128xf32>
    %50 = vector.extract_strided_slice %48 {offsets = [2, 0], sizes = [2, 128], strides = [1, 1]} : vector<8x128xf32> to vector<2x128xf32>
    %51 = vector.extract_strided_slice %48 {offsets = [4, 0], sizes = [2, 128], strides = [1, 1]} : vector<8x128xf32> to vector<2x128xf32>
    %52 = vector.extract_strided_slice %48 {offsets = [6, 0], sizes = [2, 128], strides = [1, 1]} : vector<8x128xf32> to vector<2x128xf32>
    %53 = arith.mulf %50, %33 : vector<2x128xf32>
    %54 = arith.mulf %49, %51 : vector<2x128xf32>
    %55 = arith.addf %53, %54 : vector<2x128xf32>
    %56 = math.tanh %55 : vector<2x128xf32>
    %57 = arith.mulf %52, %56 : vector<2x128xf32>
    %58 = vector.extract_strided_slice %57 {offsets = [0, 0], sizes = [1, 128], strides = [1, 1]} : vector<2x128xf32> to vector<1x128xf32>
    %59 = vector.shape_cast %58 : vector<1x128xf32> to vector<1x128xf32>
    %60 = vector.broadcast %59 : vector<1x128xf32> to vector<8x128xf32>
    %61 = vector.extract_strided_slice %57 {offsets = [1, 0], sizes = [1, 128], strides = [1, 1]} : vector<2x128xf32> to vector<1x128xf32>
    %62 = vector.shape_cast %61 : vector<1x128xf32> to vector<1x128xf32>
    %63 = vector.broadcast %62 : vector<1x128xf32> to vector<8x128xf32>
    %64 = vector.extract_strided_slice %57 {offsets = [0, 0], sizes = [1, 128], strides = [1, 1]} : vector<2x128xf32> to vector<1x128xf32>
    %65 = arith.mulf %24, %64 : vector<1x128xf32>
    %66 = vector.extract_strided_slice %57 {offsets = [1, 0], sizes = [1, 128], strides = [1, 1]} : vector<2x128xf32> to vector<1x128xf32>
    %67 = arith.mulf %27, %66 : vector<1x128xf32>
    %68 = arith.addf %65, %67 : vector<1x128xf32>
    %69 = arith.addf %68, %30 : vector<1x128xf32>
    %70 = vector.extract_strided_slice %37 {offsets = [1, 0], sizes = [1, 128], strides = [1, 1]} : vector<8x128xf32> to vector<1x128xf32>
    %71 = vector.broadcast %70 : vector<1x128xf32> to vector<8x128xf32>
    %72 = arith.mulf %6, %71 : vector<8x128xf32>
    %73 = arith.addf %72, %15 : vector<8x128xf32>
    %74 = arith.mulf %9, %60 : vector<8x128xf32>
    %75 = arith.addf %73, %74 : vector<8x128xf32>
    %76 = arith.mulf %12, %63 : vector<8x128xf32>
    %77 = arith.addf %75, %76 : vector<8x128xf32>
    %78 = math.tanh %77 : vector<8x128xf32>
    %79 = arith.mulf %78, %18 : vector<8x128xf32>
    %80 = arith.addf %79, %21 : vector<8x128xf32>
    %81 = vector.extract_strided_slice %80 {offsets = [0, 0], sizes = [2, 128], strides = [1, 1]} : vector<8x128xf32> to vector<2x128xf32>
    %82 = vector.extract_strided_slice %80 {offsets = [2, 0], sizes = [2, 128], strides = [1, 1]} : vector<8x128xf32> to vector<2x128xf32>
    %83 = vector.extract_strided_slice %80 {offsets = [4, 0], sizes = [2, 128], strides = [1, 1]} : vector<8x128xf32> to vector<2x128xf32>
    %84 = vector.extract_strided_slice %80 {offsets = [6, 0], sizes = [2, 128], strides = [1, 1]} : vector<8x128xf32> to vector<2x128xf32>
    %85 = arith.mulf %82, %55 : vector<2x128xf32>
    %86 = arith.mulf %81, %83 : vector<2x128xf32>
    %87 = arith.addf %85, %86 : vector<2x128xf32>
    %88 = math.tanh %87 : vector<2x128xf32>
    %89 = arith.mulf %84, %88 : vector<2x128xf32>
    %90 = vector.extract_strided_slice %89 {offsets = [0, 0], sizes = [1, 128], strides = [1, 1]} : vector<2x128xf32> to vector<1x128xf32>
    %91 = vector.shape_cast %90 : vector<1x128xf32> to vector<1x128xf32>
    %92 = vector.broadcast %91 : vector<1x128xf32> to vector<8x128xf32>
    %93 = vector.extract_strided_slice %89 {offsets = [1, 0], sizes = [1, 128], strides = [1, 1]} : vector<2x128xf32> to vector<1x128xf32>
    %94 = vector.shape_cast %93 : vector<1x128xf32> to vector<1x128xf32>
    %95 = vector.broadcast %94 : vector<1x128xf32> to vector<8x128xf32>
    %96 = vector.extract_strided_slice %89 {offsets = [0, 0], sizes = [1, 128], strides = [1, 1]} : vector<2x128xf32> to vector<1x128xf32>
    %97 = arith.mulf %24, %96 : vector<1x128xf32>
    %98 = vector.extract_strided_slice %89 {offsets = [1, 0], sizes = [1, 128], strides = [1, 1]} : vector<2x128xf32> to vector<1x128xf32>
    %99 = arith.mulf %27, %98 : vector<1x128xf32>
    %100 = arith.addf %97, %99 : vector<1x128xf32>
    %101 = arith.addf %100, %30 : vector<1x128xf32>
    %102 = vector.extract_strided_slice %37 {offsets = [2, 0], sizes = [1, 128], strides = [1, 1]} : vector<8x128xf32> to vector<1x128xf32>
    %103 = vector.broadcast %102 : vector<1x128xf32> to vector<8x128xf32>
    %104 = arith.mulf %6, %103 : vector<8x128xf32>
    %105 = arith.addf %104, %15 : vector<8x128xf32>
    %106 = arith.mulf %9, %92 : vector<8x128xf32>
    %107 = arith.addf %105, %106 : vector<8x128xf32>
    %108 = arith.mulf %12, %95 : vector<8x128xf32>
    %109 = arith.addf %107, %108 : vector<8x128xf32>
    %110 = math.tanh %109 : vector<8x128xf32>
    %111 = arith.mulf %110, %18 : vector<8x128xf32>
    %112 = arith.addf %111, %21 : vector<8x128xf32>
    %113 = vector.extract_strided_slice %112 {offsets = [0, 0], sizes = [2, 128], strides = [1, 1]} : vector<8x128xf32> to vector<2x128xf32>
    %114 = vector.extract_strided_slice %112 {offsets = [2, 0], sizes = [2, 128], strides = [1, 1]} : vector<8x128xf32> to vector<2x128xf32>
    %115 = vector.extract_strided_slice %112 {offsets = [4, 0], sizes = [2, 128], strides = [1, 1]} : vector<8x128xf32> to vector<2x128xf32>
    %116 = vector.extract_strided_slice %112 {offsets = [6, 0], sizes = [2, 128], strides = [1, 1]} : vector<8x128xf32> to vector<2x128xf32>
    %117 = arith.mulf %114, %87 : vector<2x128xf32>
    %118 = arith.mulf %113, %115 : vector<2x128xf32>
    %119 = arith.addf %117, %118 : vector<2x128xf32>
    %120 = math.tanh %119 : vector<2x128xf32>
    %121 = arith.mulf %116, %120 : vector<2x128xf32>
    %122 = vector.extract_strided_slice %121 {offsets = [0, 0], sizes = [1, 128], strides = [1, 1]} : vector<2x128xf32> to vector<1x128xf32>
    %123 = vector.shape_cast %122 : vector<1x128xf32> to vector<1x128xf32>
    %124 = vector.broadcast %123 : vector<1x128xf32> to vector<8x128xf32>
    %125 = vector.extract_strided_slice %121 {offsets = [1, 0], sizes = [1, 128], strides = [1, 1]} : vector<2x128xf32> to vector<1x128xf32>
    %126 = vector.shape_cast %125 : vector<1x128xf32> to vector<1x128xf32>
    %127 = vector.broadcast %126 : vector<1x128xf32> to vector<8x128xf32>
    %128 = vector.extract_strided_slice %121 {offsets = [0, 0], sizes = [1, 128], strides = [1, 1]} : vector<2x128xf32> to vector<1x128xf32>
    %129 = arith.mulf %24, %128 : vector<1x128xf32>
    %130 = vector.extract_strided_slice %121 {offsets = [1, 0], sizes = [1, 128], strides = [1, 1]} : vector<2x128xf32> to vector<1x128xf32>
    %131 = arith.mulf %27, %130 : vector<1x128xf32>
    %132 = arith.addf %129, %131 : vector<1x128xf32>
    %133 = arith.addf %132, %30 : vector<1x128xf32>
    %134 = vector.extract_strided_slice %37 {offsets = [3, 0], sizes = [1, 128], strides = [1, 1]} : vector<8x128xf32> to vector<1x128xf32>
    %135 = vector.broadcast %134 : vector<1x128xf32> to vector<8x128xf32>
    %136 = arith.mulf %6, %135 : vector<8x128xf32>
    %137 = arith.addf %136, %15 : vector<8x128xf32>
    %138 = arith.mulf %9, %124 : vector<8x128xf32>
    %139 = arith.addf %137, %138 : vector<8x128xf32>
    %140 = arith.mulf %12, %127 : vector<8x128xf32>
    %141 = arith.addf %139, %140 : vector<8x128xf32>
    %142 = math.tanh %141 : vector<8x128xf32>
    %143 = arith.mulf %142, %18 : vector<8x128xf32>
    %144 = arith.addf %143, %21 : vector<8x128xf32>
    %145 = vector.extract_strided_slice %144 {offsets = [0, 0], sizes = [2, 128], strides = [1, 1]} : vector<8x128xf32> to vector<2x128xf32>
    %146 = vector.extract_strided_slice %144 {offsets = [2, 0], sizes = [2, 128], strides = [1, 1]} : vector<8x128xf32> to vector<2x128xf32>
    %147 = vector.extract_strided_slice %144 {offsets = [4, 0], sizes = [2, 128], strides = [1, 1]} : vector<8x128xf32> to vector<2x128xf32>
    %148 = vector.extract_strided_slice %144 {offsets = [6, 0], sizes = [2, 128], strides = [1, 1]} : vector<8x128xf32> to vector<2x128xf32>
    %149 = arith.mulf %146, %119 : vector<2x128xf32>
    %150 = arith.mulf %145, %147 : vector<2x128xf32>
    %151 = arith.addf %149, %150 : vector<2x128xf32>
    %152 = math.tanh %151 : vector<2x128xf32>
    %153 = arith.mulf %148, %152 : vector<2x128xf32>
    %154 = vector.extract_strided_slice %153 {offsets = [0, 0], sizes = [1, 128], strides = [1, 1]} : vector<2x128xf32> to vector<1x128xf32>
    %155 = vector.shape_cast %154 : vector<1x128xf32> to vector<1x128xf32>
    %156 = vector.broadcast %155 : vector<1x128xf32> to vector<8x128xf32>
    %157 = vector.extract_strided_slice %153 {offsets = [1, 0], sizes = [1, 128], strides = [1, 1]} : vector<2x128xf32> to vector<1x128xf32>
    %158 = vector.shape_cast %157 : vector<1x128xf32> to vector<1x128xf32>
    %159 = vector.broadcast %158 : vector<1x128xf32> to vector<8x128xf32>
    %160 = vector.extract_strided_slice %153 {offsets = [0, 0], sizes = [1, 128], strides = [1, 1]} : vector<2x128xf32> to vector<1x128xf32>
    %161 = arith.mulf %24, %160 : vector<1x128xf32>
    %162 = vector.extract_strided_slice %153 {offsets = [1, 0], sizes = [1, 128], strides = [1, 1]} : vector<2x128xf32> to vector<1x128xf32>
    %163 = arith.mulf %27, %162 : vector<1x128xf32>
    %164 = arith.addf %161, %163 : vector<1x128xf32>
    %165 = arith.addf %164, %30 : vector<1x128xf32>
    %166 = vector.extract_strided_slice %37 {offsets = [4, 0], sizes = [1, 128], strides = [1, 1]} : vector<8x128xf32> to vector<1x128xf32>
    %167 = vector.broadcast %166 : vector<1x128xf32> to vector<8x128xf32>
    %168 = arith.mulf %6, %167 : vector<8x128xf32>
    %169 = arith.addf %168, %15 : vector<8x128xf32>
    %170 = arith.mulf %9, %156 : vector<8x128xf32>
    %171 = arith.addf %169, %170 : vector<8x128xf32>
    %172 = arith.mulf %12, %159 : vector<8x128xf32>
    %173 = arith.addf %171, %172 : vector<8x128xf32>
    %174 = math.tanh %173 : vector<8x128xf32>
    %175 = arith.mulf %174, %18 : vector<8x128xf32>
    %176 = arith.addf %175, %21 : vector<8x128xf32>
    %177 = vector.extract_strided_slice %176 {offsets = [0, 0], sizes = [2, 128], strides = [1, 1]} : vector<8x128xf32> to vector<2x128xf32>
    %178 = vector.extract_strided_slice %176 {offsets = [2, 0], sizes = [2, 128], strides = [1, 1]} : vector<8x128xf32> to vector<2x128xf32>
    %179 = vector.extract_strided_slice %176 {offsets = [4, 0], sizes = [2, 128], strides = [1, 1]} : vector<8x128xf32> to vector<2x128xf32>
    %180 = vector.extract_strided_slice %176 {offsets = [6, 0], sizes = [2, 128], strides = [1, 1]} : vector<8x128xf32> to vector<2x128xf32>
    %181 = arith.mulf %178, %151 : vector<2x128xf32>
    %182 = arith.mulf %177, %179 : vector<2x128xf32>
    %183 = arith.addf %181, %182 : vector<2x128xf32>
    %184 = math.tanh %183 : vector<2x128xf32>
    %185 = arith.mulf %180, %184 : vector<2x128xf32>
    %186 = vector.extract_strided_slice %185 {offsets = [0, 0], sizes = [1, 128], strides = [1, 1]} : vector<2x128xf32> to vector<1x128xf32>
    %187 = vector.shape_cast %186 : vector<1x128xf32> to vector<1x128xf32>
    %188 = vector.broadcast %187 : vector<1x128xf32> to vector<8x128xf32>
    %189 = vector.extract_strided_slice %185 {offsets = [1, 0], sizes = [1, 128], strides = [1, 1]} : vector<2x128xf32> to vector<1x128xf32>
    %190 = vector.shape_cast %189 : vector<1x128xf32> to vector<1x128xf32>
    %191 = vector.broadcast %190 : vector<1x128xf32> to vector<8x128xf32>
    %192 = vector.extract_strided_slice %185 {offsets = [0, 0], sizes = [1, 128], strides = [1, 1]} : vector<2x128xf32> to vector<1x128xf32>
    %193 = arith.mulf %24, %192 : vector<1x128xf32>
    %194 = vector.extract_strided_slice %185 {offsets = [1, 0], sizes = [1, 128], strides = [1, 1]} : vector<2x128xf32> to vector<1x128xf32>
    %195 = arith.mulf %27, %194 : vector<1x128xf32>
    %196 = arith.addf %193, %195 : vector<1x128xf32>
    %197 = arith.addf %196, %30 : vector<1x128xf32>
    %198 = vector.extract_strided_slice %37 {offsets = [5, 0], sizes = [1, 128], strides = [1, 1]} : vector<8x128xf32> to vector<1x128xf32>
    %199 = vector.broadcast %198 : vector<1x128xf32> to vector<8x128xf32>
    %200 = arith.mulf %6, %199 : vector<8x128xf32>
    %201 = arith.addf %200, %15 : vector<8x128xf32>
    %202 = arith.mulf %9, %188 : vector<8x128xf32>
    %203 = arith.addf %201, %202 : vector<8x128xf32>
    %204 = arith.mulf %12, %191 : vector<8x128xf32>
    %205 = arith.addf %203, %204 : vector<8x128xf32>
    %206 = math.tanh %205 : vector<8x128xf32>
    %207 = arith.mulf %206, %18 : vector<8x128xf32>
    %208 = arith.addf %207, %21 : vector<8x128xf32>
    %209 = vector.extract_strided_slice %208 {offsets = [0, 0], sizes = [2, 128], strides = [1, 1]} : vector<8x128xf32> to vector<2x128xf32>
    %210 = vector.extract_strided_slice %208 {offsets = [2, 0], sizes = [2, 128], strides = [1, 1]} : vector<8x128xf32> to vector<2x128xf32>
    %211 = vector.extract_strided_slice %208 {offsets = [4, 0], sizes = [2, 128], strides = [1, 1]} : vector<8x128xf32> to vector<2x128xf32>
    %212 = vector.extract_strided_slice %208 {offsets = [6, 0], sizes = [2, 128], strides = [1, 1]} : vector<8x128xf32> to vector<2x128xf32>
    %213 = arith.mulf %210, %183 : vector<2x128xf32>
    %214 = arith.mulf %209, %211 : vector<2x128xf32>
    %215 = arith.addf %213, %214 : vector<2x128xf32>
    %216 = math.tanh %215 : vector<2x128xf32>
    %217 = arith.mulf %212, %216 : vector<2x128xf32>
    %218 = vector.extract_strided_slice %217 {offsets = [0, 0], sizes = [1, 128], strides = [1, 1]} : vector<2x128xf32> to vector<1x128xf32>
    %219 = vector.shape_cast %218 : vector<1x128xf32> to vector<1x128xf32>
    %220 = vector.broadcast %219 : vector<1x128xf32> to vector<8x128xf32>
    %221 = vector.extract_strided_slice %217 {offsets = [1, 0], sizes = [1, 128], strides = [1, 1]} : vector<2x128xf32> to vector<1x128xf32>
    %222 = vector.shape_cast %221 : vector<1x128xf32> to vector<1x128xf32>
    %223 = vector.broadcast %222 : vector<1x128xf32> to vector<8x128xf32>
    %224 = vector.extract_strided_slice %217 {offsets = [0, 0], sizes = [1, 128], strides = [1, 1]} : vector<2x128xf32> to vector<1x128xf32>
    %225 = arith.mulf %24, %224 : vector<1x128xf32>
    %226 = vector.extract_strided_slice %217 {offsets = [1, 0], sizes = [1, 128], strides = [1, 1]} : vector<2x128xf32> to vector<1x128xf32>
    %227 = arith.mulf %27, %226 : vector<1x128xf32>
    %228 = arith.addf %225, %227 : vector<1x128xf32>
    %229 = arith.addf %228, %30 : vector<1x128xf32>
    %230 = vector.extract_strided_slice %37 {offsets = [6, 0], sizes = [1, 128], strides = [1, 1]} : vector<8x128xf32> to vector<1x128xf32>
    %231 = vector.broadcast %230 : vector<1x128xf32> to vector<8x128xf32>
    %232 = arith.mulf %6, %231 : vector<8x128xf32>
    %233 = arith.addf %232, %15 : vector<8x128xf32>
    %234 = arith.mulf %9, %220 : vector<8x128xf32>
    %235 = arith.addf %233, %234 : vector<8x128xf32>
    %236 = arith.mulf %12, %223 : vector<8x128xf32>
    %237 = arith.addf %235, %236 : vector<8x128xf32>
    %238 = math.tanh %237 : vector<8x128xf32>
    %239 = arith.mulf %238, %18 : vector<8x128xf32>
    %240 = arith.addf %239, %21 : vector<8x128xf32>
    %241 = vector.extract_strided_slice %240 {offsets = [0, 0], sizes = [2, 128], strides = [1, 1]} : vector<8x128xf32> to vector<2x128xf32>
    %242 = vector.extract_strided_slice %240 {offsets = [2, 0], sizes = [2, 128], strides = [1, 1]} : vector<8x128xf32> to vector<2x128xf32>
    %243 = vector.extract_strided_slice %240 {offsets = [4, 0], sizes = [2, 128], strides = [1, 1]} : vector<8x128xf32> to vector<2x128xf32>
    %244 = vector.extract_strided_slice %240 {offsets = [6, 0], sizes = [2, 128], strides = [1, 1]} : vector<8x128xf32> to vector<2x128xf32>
    %245 = arith.mulf %242, %215 : vector<2x128xf32>
    %246 = arith.mulf %241, %243 : vector<2x128xf32>
    %247 = arith.addf %245, %246 : vector<2x128xf32>
    %248 = math.tanh %247 : vector<2x128xf32>
    %249 = arith.mulf %244, %248 : vector<2x128xf32>
    %250 = vector.extract_strided_slice %249 {offsets = [0, 0], sizes = [1, 128], strides = [1, 1]} : vector<2x128xf32> to vector<1x128xf32>
    %251 = vector.shape_cast %250 : vector<1x128xf32> to vector<1x128xf32>
    %252 = vector.broadcast %251 : vector<1x128xf32> to vector<8x128xf32>
    %253 = vector.extract_strided_slice %249 {offsets = [1, 0], sizes = [1, 128], strides = [1, 1]} : vector<2x128xf32> to vector<1x128xf32>
    %254 = vector.shape_cast %253 : vector<1x128xf32> to vector<1x128xf32>
    %255 = vector.broadcast %254 : vector<1x128xf32> to vector<8x128xf32>
    %256 = vector.extract_strided_slice %249 {offsets = [0, 0], sizes = [1, 128], strides = [1, 1]} : vector<2x128xf32> to vector<1x128xf32>
    %257 = arith.mulf %24, %256 : vector<1x128xf32>
    %258 = vector.extract_strided_slice %249 {offsets = [1, 0], sizes = [1, 128], strides = [1, 1]} : vector<2x128xf32> to vector<1x128xf32>
    %259 = arith.mulf %27, %258 : vector<1x128xf32>
    %260 = arith.addf %257, %259 : vector<1x128xf32>
    %261 = arith.addf %260, %30 : vector<1x128xf32>
    %262 = vector.extract_strided_slice %37 {offsets = [7, 0], sizes = [1, 128], strides = [1, 1]} : vector<8x128xf32> to vector<1x128xf32>
    %263 = vector.broadcast %262 : vector<1x128xf32> to vector<8x128xf32>
    %264 = arith.mulf %6, %263 : vector<8x128xf32>
    %265 = arith.addf %264, %15 : vector<8x128xf32>
    %266 = arith.mulf %9, %252 : vector<8x128xf32>
    %267 = arith.addf %265, %266 : vector<8x128xf32>
    %268 = arith.mulf %12, %255 : vector<8x128xf32>
    %269 = arith.addf %267, %268 : vector<8x128xf32>
    %270 = math.tanh %269 : vector<8x128xf32>
    %271 = arith.mulf %270, %18 : vector<8x128xf32>
    %272 = arith.addf %271, %21 : vector<8x128xf32>
    %273 = vector.extract_strided_slice %272 {offsets = [0, 0], sizes = [2, 128], strides = [1, 1]} : vector<8x128xf32> to vector<2x128xf32>
    %274 = vector.extract_strided_slice %272 {offsets = [2, 0], sizes = [2, 128], strides = [1, 1]} : vector<8x128xf32> to vector<2x128xf32>
    %275 = vector.extract_strided_slice %272 {offsets = [4, 0], sizes = [2, 128], strides = [1, 1]} : vector<8x128xf32> to vector<2x128xf32>
    %276 = vector.extract_strided_slice %272 {offsets = [6, 0], sizes = [2, 128], strides = [1, 1]} : vector<8x128xf32> to vector<2x128xf32>
    %277 = arith.mulf %274, %247 : vector<2x128xf32>
    %278 = arith.mulf %273, %275 : vector<2x128xf32>
    %279 = arith.addf %277, %278 : vector<2x128xf32>
    %280 = math.tanh %279 : vector<2x128xf32>
    %281 = arith.mulf %276, %280 : vector<2x128xf32>
    %282 = vector.extract_strided_slice %281 {offsets = [0, 0], sizes = [1, 128], strides = [1, 1]} : vector<2x128xf32> to vector<1x128xf32>
    %283 = vector.shape_cast %282 : vector<1x128xf32> to vector<1x128xf32>
    %284 = vector.broadcast %283 : vector<1x128xf32> to vector<8x128xf32>
    %285 = vector.extract_strided_slice %281 {offsets = [1, 0], sizes = [1, 128], strides = [1, 1]} : vector<2x128xf32> to vector<1x128xf32>
    %286 = vector.shape_cast %285 : vector<1x128xf32> to vector<1x128xf32>
    %287 = vector.broadcast %286 : vector<1x128xf32> to vector<8x128xf32>
    %288 = vector.extract_strided_slice %281 {offsets = [0, 0], sizes = [1, 128], strides = [1, 1]} : vector<2x128xf32> to vector<1x128xf32>
    %289 = arith.mulf %24, %288 : vector<1x128xf32>
    %290 = vector.extract_strided_slice %281 {offsets = [1, 0], sizes = [1, 128], strides = [1, 1]} : vector<2x128xf32> to vector<1x128xf32>
    %291 = arith.mulf %27, %290 : vector<1x128xf32>
    %292 = arith.addf %289, %291 : vector<1x128xf32>
    %293 = arith.addf %292, %30 : vector<1x128xf32>
    %294 = tpu.concatenate %69, %101, %133, %165, %197, %229, %261, %293 in 0 : vector<1x128xf32>, vector<1x128xf32>, vector<1x128xf32>, vector<1x128xf32>, vector<1x128xf32>, vector<1x128xf32>, vector<1x128xf32>, vector<1x128xf32> -> vector<8x128xf32>
    %295 = arith.index_cast %35 : i32 to index
    %c0_10 = arith.constant 0 : index
    %296 = vector.load %arg4[%295, %c0_10] : memref<8x128xf32, #tpu.memory_space<vmem>>, vector<8x128xf32>
    tpu.vector_store %arg4[%295, %c0_10], %294 {strides = array<i32>} : memref<8x128xf32, #tpu.memory_space<vmem>>, vector<8x128xf32>,
    %c1_i32 = arith.constant 1 : i32
    %c0_11 = arith.constant 0 : index
    %c0_12 = arith.constant 0 : index
    %297 = vector.load %arg5[%c0_11, %c0_12] : memref<8x128xf32, #tpu.memory_space<vmem>>, vector<8x128xf32>
    tpu.vector_store %arg5[%c0_11, %c0_12], %284 {strides = array<i32>} : memref<8x128xf32, #tpu.memory_space<vmem>>, vector<8x128xf32>,
    %c0_13 = arith.constant 0 : index
    %c0_14 = arith.constant 0 : index
    %298 = vector.load %arg6[%c0_13, %c0_14] : memref<8x128xf32, #tpu.memory_space<vmem>>, vector<8x128xf32>
    tpu.vector_store %arg6[%c0_13, %c0_14], %287 {strides = array<i32>} : memref<8x128xf32, #tpu.memory_space<vmem>>, vector<8x128xf32>,
    %c0_15 = arith.constant 0 : index
    %c0_16 = arith.constant 0 : index
    %299 = vector.load %arg7[%c0_15, %c0_16] : memref<2x128xf32, #tpu.memory_space<vmem>>, vector<2x128xf32>
    tpu.vector_store %arg7[%c0_15, %c0_16], %279 {strides = array<i32>} : memref<2x128xf32, #tpu.memory_space<vmem>>, vector<2x128xf32>,
    return
  }
  func.func @transform_0(%arg0: i32, %arg1: i32) -> (i32, i32) {
    %c0_i32 = arith.constant 0 : i32
    return %arg1, %arg0 : i32, i32
  }
  func.func @transform_1(%arg0: i32, %arg1: i32) -> (i32, i32) {
    %c0_i32 = arith.constant 0 : i32
    %c0_i32_0 = arith.constant 0 : i32
    %c0_i32_1 = arith.constant 0 : i32
    return %c0_i32, %c0_i32_0 : i32, i32
  }
  func.func @transform_2(%arg0: i32, %arg1: i32) -> (i32, i32) {
    %c0_i32 = arith.constant 0 : i32
    return %arg1, %arg0 : i32, i32
  }
}

</mosaic_0001>

<bundles_post_ra>
// kernel: tpu_custom_call.1
= control target key start
LH: loop header
LB: loop body
LE: loop exit
PB: predicated region body
PF: predicated region fallthrough
CT: control target
= control target key end

     0   :  { %7 = vsyncpa [#allocation6], 0  ;;  %s790_s0 = inlined_call_operand.hbm [shape: f32[8,128], index: 0, kind: input, shape index: {}]   ;;  %s791_s1 = inlined_call_operand.hbm [shape: f32[8,8], index: 1, kind: input, shape index: {}]   ;;  %s792_s2 = inlined_call_operand.hbm [shape: f32[8,128], index: 2, kind: output, shape index: {}]  }
   0x1   :  { %8 = vsyncpa [#allocation9], 0 }
   0x2   :  { %9 = vsyncpa [#allocation7], 0  ;;  %s612_s9 = smov [#allocation5]   ;;  %s613_s11 = smov [#allocation8]  }
   0x3   :  { %s16_s10 = sshll.u32 %s612_s9, 4  ;;  %s26_s12 = sshll.u32 %s613_s11, 4  ;;  %s17_s10 = int_to_ptr.vmem [resolvable:$true] %s16_s10  ;;  %s27_s12 = int_to_ptr.vmem [resolvable:$true] %s26_s12 }
   0x4   :  { %s540_s15 = scalar_lea.hbm %s790_s0, 128 }
   0x5   :  { %p541_p0 = scmp.ne.s32.totalorder %s790_s0, %s540_s15  ;;  %p544_p1 = scmp.lt.u32.totalorder %s540_s15, %s790_s0 }
   0x7   :  { %p546_p2 = pnand %p544_p1, %p541_p0 }
   0x9   :  { %549 = shalt.err (!%p546_p2)
}
   0xa   :  { %s550_s20 = scalar_lea.vmem %s17_s10, 128  ;;  %p555_p4 = scmp.lt.s32.totalorder %s17_s10, %s17_s10 }
   0xb   :  { %p551_p3 = scmp.ne.s32.totalorder %s17_s10, %s550_s20  ;;  %p556_p5 = scmp.lt.s32.totalorder %s550_s20, %s550_s20 }
   0xd   :  { %p557_p6 = por %p556_p5, %p555_p4 }
   0xf   :  { %p558_p7 = pnand %p557_p6, %p551_p3 }
  0x11   :  { %561 = shalt.err (!%p558_p7)
}
  0x12   :  { %19 = dma.hbm_to_vmem [thread:$0]  %s790_s0, 128, %s17_s10, [#allocation6]  }
  0x13   :  { %s562_s25 = scalar_lea.hbm %s791_s1, 128 }
  0x14   :  { %p563_p8 = scmp.ne.s32.totalorder %s791_s1, %s562_s25  ;;  %p566_p9 = scmp.lt.u32.totalorder %s562_s25, %s791_s1 }
  0x16   :  { %p568_p10 = pnand %p566_p9, %p563_p8 }
  0x18   :  { %571 = shalt.err (!%p568_p10)
}
  0x19   :  { %s572_s30 = scalar_lea.vmem %s27_s12, 128  ;;  %p577_p12 = scmp.lt.s32.totalorder %s27_s12, %s27_s12 }
  0x1a   :  { %p573_p11 = scmp.ne.s32.totalorder %s27_s12, %s572_s30  ;;  %p578_p13 = scmp.lt.s32.totalorder %s572_s30, %s572_s30 }
  0x1c   :  { %p579_p0 = por %p578_p13, %p577_p12 }
  0x1e   :  { %p580_p1 = pnand %p579_p0, %p573_p11 }
  0x20   :  { %583 = shalt.err (!%p580_p1)
}
  0x21   :  { %29 = dma.hbm_to_vmem [thread:$0]  %s791_s1, 128, %s27_s12, [#allocation9]  }
  0x22   :  { %606 = dma.done.wait [#allocation6], 128  }
  0x23   :  { %607 = vsyncadd [#allocation6], 4294967168 }
  0x24   :  { %608 = dma.done.wait [#allocation9], 128  }
  0x25   :  { %609 = vsyncadd [#allocation9], 4294967168  ;;  %v614_v0 = vmov 0.0   ;;  %v615_v1 = vmov 0   ;;  %v616_v2 = vmov 3   ;;  %v77_v3 = vlaneseq  ;;  %v43_v5 = vld [vmem:[#allocation8] sm:$0xff] }
  0x26   :  { %42 = vst [vmem:[#allocation4] sm:$0x3] %v614_v0  ;;  %500 = vset.pattern.permute.xlu0 %v615_v1  ;;  %502 = vset.pattern.permute.xlu1 %v616_v2  ;;  %v664_v6 = vld [vmem:[#allocation5] sm:$0xff]  ;;  %v617_v15 = vmov 1   ;;  %v618_v16 = vmov 2   ;;  %v619_v17 = vmov 4  }
  0x27   :  { %v662_v4 = vshrl.u32 %v77_v3, 7  ;;  %46 = vperm.xlu0 %500, %v43_v5   ;;  %58 = vperm.xlu1 %502, %v43_v5   ;;  %v620_v18 = vmov 5   ;;  %v621_v19 = vmov 6   ;;  %vm455_vm0 = vcmask 1040384   ;;  %s622_s1 = smov [#allocation10]  }
  0x28   :  { %vm457_vm1 = vcmask 1041408   ;;  %vm459_vm2 = vcmask 1042432   ;;  %vm461_vm3 = vcmask 1043456   ;;  %vm463_vm4 = vcmask 1044480   ;;  %s479_s4 = sshll.u32 %s622_s1, 4  ;;  %s480_s4 = int_to_ptr.vmem [resolvable:$true] %s479_s4 }
  0x29   :  { %v172_v7 = vsub.s32 2, %v662_v4  ;;  %v216_v8 = vsub.s32 3, %v662_v4  ;;  %v260_v9 = vsub.s32 4, %v662_v4  ;;  %v304_v10 = vsub.s32 5, %v662_v4  ;;  %s584_s5 = scalar_lea.vmem %s480_s4, 128  ;;  %p589_p3 = scmp.lt.s32.totalorder %s480_s4, %s480_s4 }
  0x2a   :  { %v79_v20 = vsub.s32 0, %v662_v4  ;;  %v676_v21 = vsub.s32 6, %v662_v4  ;;  %v679_v22 = vsub.s32 7, %v662_v4  ;;  %v128_v60 = vsub.s32 1, %v662_v4  ;;  %p585_p2 = scmp.ne.s32.totalorder %s480_s4, %s584_s5  ;;  %p590_p4 = scmp.lt.s32.totalorder %s584_s5, %s584_s5 }
  0x2b   :  { %v173_v11 = vrot.slane %v664_v6, %v172_v7  ;;  %v217_v12 = vrot.slane %v664_v6, %v216_v8  ;;  %v261_v13 = vrot.slane %v664_v6, %v260_v9  ;;  %v305_v14 = vrot.slane %v664_v6, %v304_v10  ;;  %501 = vset.pattern.permute.xlu0 %v617_v15 }
  0x2c   :  { %503 = vset.pattern.permute.xlu1 %v618_v16  ;;  %50 = vperm.xlu0 %501, %v43_v5   ;;  %v80_v23 = vrot.slane %v664_v6, %v79_v20  ;;  %v349_v24 = vrot.slane %v664_v6, %v676_v21  ;;  %v393_v25 = vrot.slane %v664_v6, %v679_v22  ;;  %vm465_vm5 = vcmask 1045504   ;;  %p591_p5 = por %p590_p4, %p589_p3 }
  0x2d   :  { %54 = vperm.xlu1 %503, %v43_v5   ;;  %v75_v52 = vld [vmem:[#allocation4] sm:$0x3]  ;;  %v129_v61 = vrot.slane %v664_v6, %v128_v60  ;;  %vm467_vm6 = vcmask 1046528  }
  0x2e   :  { %v91_v54 = vrot.slane %v75_v52, 6  ;;  %p592_p6 = pnand %p591_p5, %p585_p2 }
  0x30   :  { %505 = vset.pattern.permute.xlu0 %v620_v18 }
  0x31   :  { %504 = vset.pattern.permute.xlu1 %v619_v17  ;;  %66 = vperm.xlu0 %505, %v43_v5  }
  0x32   :  { %62 = vperm.xlu1 %504, %v43_v5  }
  0x35   :  { %507 = vset.pattern.permute.xlu0 %v621_v19 }
  0x36   :  { %506 = vset.pattern.permute.xlu1 %v621_v19 }
  0x37   :  { %70 = vperm.xlu1 %506, %v43_v5  }
  0xa6   :  { %v47_v26 = vpop.permute.xlu0 %46  ;;  %v59_v27 = vpop.permute.xlu1 %58 }
  0xa7   :  { %v81_v28 = vmul.f32 %v80_v23, %v47_v26  ;;  %v174_v29 = vmul.f32 %v173_v11, %v47_v26  ;;  %v218_v30 = vmul.f32 %v217_v12, %v47_v26  ;;  %v262_v31 = vmul.f32 %v261_v13, %v47_v26 }
  0xa8   :  { %v306_v32 = vmul.f32 %v305_v14, %v47_v26  ;;  %v350_v33 = vmul.f32 %v349_v24, %v47_v26  ;;  %v394_v34 = vmul.f32 %v393_v25, %v47_v26  ;;  %v130_v0 = vmul.f32 %v129_v61, %v47_v26 }
  0xa9   :  { %v175_v35 = vadd.f32 %v174_v29, %v59_v27  ;;  %v686_v36 = vadd.f32 %v218_v30, %v59_v27  ;;  %v688_v37 = vadd.f32 %v262_v31, %v59_v27  ;;  %v82_v43 = vadd.f32 %v81_v28, %v59_v27 }
  0xaa   :  { %v690_v38 = vadd.f32 %v306_v32, %v59_v27  ;;  %v692_v39 = vadd.f32 %v350_v33, %v59_v27  ;;  %v694_v40 = vadd.f32 %v394_v34, %v59_v27  ;;  %v131_v5 = vadd.f32 %v130_v0, %v59_v27 }
  0xab   :  { %v696_v41 = vpop.permute.xlu0 %50 }
  0xac   :  { %v698_v42 = vpop.permute.xlu1 %54  ;;  %v83_v44 = vmul.f32 0.0, %v696_v41 }
  0xad   :  { %v85_v45 = vmul.f32 0.0, %v698_v42 }
  0xae   :  { %v84_v46 = vadd.f32 %v83_v44, %v82_v43 }
  0xb0   :  { %v86_v47 = vadd.f32 %v85_v45, %v84_v46  ;;  %v704_v50 = vpop.permute.xlu0 %66 }
  0xb1   :  { %v702_v48 = vpop.permute.xlu1 %62 }
  0xb2   :  { %508 = vtanh.f32 %v86_v47 }
  0xb6   :  { %v716_v19 = vpop.permute.xlu1 %70 }
  0xb7   :  { %v725_v44 = vrot.slane %v716_v19, 2 }
  0xbc   :  { %v509_v49 = vpop.eup %508 }
  0xbd   :  { %v88_v51 = vmul.f32 %v509_v49, %v702_v48 }
  0xbf   :  { %v89_v53 = vadd.f32 %v88_v51, %v704_v50 }
  0xc1   :  { %v95_v55 = vrot.slane %v89_v53, 4  ;;  %v93_v57 = vmul.f32 %v91_v54, %v89_v53 }
  0xc3   :  { %v97_v56 = vmul.f32 %v95_v55, %v89_v53 }
  0xc5   :  { %v99_v58 = vrot.slane %v97_v56, 6 }
  0xc7   :  { %v101_v59 = vadd.f32 %v99_v58, %v93_v57 }
  0xc9   :  { %510 = vtanh.f32 %v101_v59 }
  0xd3   :  { %v511_v62 = vpop.eup %510 }
  0xd4   :  { %v104_v63 = vrot.slane %v511_v62, 4 }
  0xd6   :  { %v106_v1 = vmul.f32 %v104_v63, %v89_v53 }
  0xd8   :  { %v110_v2 = vrot.slane %v106_v1, %v676_v21  ;;  %v114_v3 = vrot.slane %v106_v1, %v679_v22  ;;  %v116_v17 = vrot.slane %v106_v1, 6 }
  0xda   :  { %v132_v7 = vmul.f32 %v110_v2, %v696_v41  ;;  %v134_v9 = vmul.f32 %v114_v3, %v698_v42  ;;  %v118_v24 = vmul.f32 %v116_v17, %v716_v19 }
  0xdc   :  { %v133_v8 = vadd.f32 %v132_v7, %v131_v5  ;;  %v120_v29 = vrot.slane %v118_v24, 1 }
  0xde   :  { %v135_v10 = vadd.f32 %v134_v9, %v133_v8  ;;  %v122_v43 = vadd.f32 %v120_v29, %v118_v24 }
  0xe0   :  { %512 = vtanh.f32 %v135_v10  ;;  %v125_v47 = vadd.f32 %v725_v44, %v122_v43 }
  0xea   :  { %v513_v11 = vpop.eup %512 }
  0xeb   :  { %v137_v4 = vmul.f32 %v513_v11, %v702_v48 }
  0xed   :  { %v138_v6 = vadd.f32 %v137_v4, %v704_v50 }
  0xef   :  { %v141_v12 = vrot.slane %v138_v6, 4  ;;  %v139_v14 = vmul.f32 %v138_v6, %v101_v59 }
  0xf1   :  { %v143_v13 = vmul.f32 %v141_v12, %v138_v6 }
  0xf3   :  { %v145_v15 = vrot.slane %v143_v13, 6 }
  0xf5   :  { %v147_v16 = vadd.f32 %v145_v15, %v139_v14 }
  0xf7   :  { %514 = vtanh.f32 %v147_v16 }
 0x101   :  { %v515_v18 = vpop.eup %514 }
 0x102   :  { %v150_v20 = vrot.slane %v515_v18, 4 }
 0x104   :  { %v152_v23 = vmul.f32 %v150_v20, %v138_v6 }
 0x106   :  { %v156_v25 = vrot.slane %v152_v23, %v676_v21  ;;  %v160_v26 = vrot.slane %v152_v23, %v679_v22  ;;  %v162_v27 = vrot.slane %v152_v23, 6 }
 0x108   :  { %v176_v28 = vmul.f32 %v156_v25, %v696_v41  ;;  %v164_v30 = vmul.f32 %v162_v27, %v716_v19  ;;  %v178_v32 = vmul.f32 %v160_v26, %v698_v42 }
 0x10a   :  { %v177_v31 = vadd.f32 %v176_v28, %v175_v35  ;;  %v166_v33 = vrot.slane %v164_v30, 1 }
 0x10c   :  { %v179_v34 = vadd.f32 %v178_v32, %v177_v31  ;;  %v168_v45 = vadd.f32 %v166_v33, %v164_v30 }
 0x10e   :  { %516 = vtanh.f32 %v179_v34  ;;  %v169_v46 = vadd.f32 %v168_v45, %v725_v44 }
 0x110   :  { %v435_v49 = vrot.slane %v169_v46, 7 }
 0x112   :  { %v456_v51 = vsel %vm455_vm0, %v125_v47, %v435_v49 }
 0x118   :  { %v517_v52 = vpop.eup %516 }
 0x119   :  { %v181_v35 = vmul.f32 %v517_v52, %v702_v48 }
 0x11b   :  { %v182_v53 = vadd.f32 %v181_v35, %v704_v50 }
 0x11d   :  { %v185_v54 = vrot.slane %v182_v53, 4  ;;  %v183_v56 = vmul.f32 %v182_v53, %v147_v16 }
 0x11f   :  { %v187_v55 = vmul.f32 %v185_v54, %v182_v53 }
 0x121   :  { %v189_v57 = vrot.slane %v187_v55, 6 }
 0x123   :  { %v191_v58 = vadd.f32 %v189_v57, %v183_v56 }
 0x125   :  { %518 = vtanh.f32 %v191_v58 }
 0x12f   :  { %v519_v59 = vpop.eup %518 }
 0x130   :  { %v194_v60 = vrot.slane %v519_v59, 4 }
 0x132   :  { %v196_v61 = vmul.f32 %v194_v60, %v182_v53 }
 0x134   :  { %v200_v62 = vrot.slane %v196_v61, %v676_v21  ;;  %v204_v63 = vrot.slane %v196_v61, %v679_v22  ;;  %v206_v0 = vrot.slane %v196_v61, 6 }
 0x136   :  { %v220_v1 = vmul.f32 %v200_v62, %v696_v41  ;;  %v208_v2 = vmul.f32 %v206_v0, %v716_v19  ;;  %v222_v5 = vmul.f32 %v204_v63, %v698_v42 }
 0x138   :  { %v221_v3 = vadd.f32 %v220_v1, %v686_v36  ;;  %v210_v7 = vrot.slane %v208_v2, 1 }
 0x13a   :  { %v223_v8 = vadd.f32 %v222_v5, %v221_v3  ;;  %v212_v9 = vadd.f32 %v210_v7, %v208_v2 }
 0x13c   :  { %520 = vtanh.f32 %v223_v8  ;;  %v213_v10 = vadd.f32 %v212_v9, %v725_v44 }
 0x13e   :  { %v438_v11 = vrot.slane %v213_v10, 6 }
 0x140   :  { %v458_v4 = vsel %vm457_vm1, %v456_v51, %v438_v11 }
 0x146   :  { %v521_v6 = vpop.eup %520 }
 0x147   :  { %v225_v12 = vmul.f32 %v521_v6, %v702_v48 }
 0x149   :  { %v226_v13 = vadd.f32 %v225_v12, %v704_v50 }
 0x14b   :  { %v227_v14 = vmul.f32 %v226_v13, %v191_v58  ;;  %v229_v15 = vrot.slane %v226_v13, 4 }
 0x14d   :  { %v231_v16 = vmul.f32 %v229_v15, %v226_v13 }
 0x14f   :  { %v233_v36 = vrot.slane %v231_v16, 6 }
 0x151   :  { %v235_v17 = vadd.f32 %v233_v36, %v227_v14 }
 0x153   :  { %522 = vtanh.f32 %v235_v17 }
 0x15d   :  { %v523_v18 = vpop.eup %522 }
 0x15e   :  { %v238_v20 = vrot.slane %v523_v18, 4 }
 0x160   :  { %v240_v23 = vmul.f32 %v238_v20, %v226_v13 }
 0x162   :  { %v244_v24 = vrot.slane %v240_v23, %v676_v21  ;;  %v248_v25 = vrot.slane %v240_v23, %v679_v22  ;;  %v250_v26 = vrot.slane %v240_v23, 6 }
 0x164   :  { %v264_v27 = vmul.f32 %v244_v24, %v696_v41  ;;  %v252_v28 = vmul.f32 %v250_v26, %v716_v19  ;;  %v266_v30 = vmul.f32 %v248_v25, %v698_v42 }
 0x166   :  { %v265_v29 = vadd.f32 %v264_v27, %v688_v37  ;;  %v254_v31 = vrot.slane %v252_v28, 1 }
 0x168   :  { %v267_v32 = vadd.f32 %v266_v30, %v265_v29  ;;  %v256_v33 = vadd.f32 %v254_v31, %v252_v28 }
 0x16a   :  { %524 = vtanh.f32 %v267_v32  ;;  %v257_v34 = vadd.f32 %v256_v33, %v725_v44 }
 0x16c   :  { %v441_v43 = vrot.slane %v257_v34, 5 }
 0x16e   :  { %v460_v45 = vsel %vm459_vm2, %v458_v4, %v441_v43 }
 0x174   :  { %v525_v46 = vpop.eup %524 }
 0x175   :  { %v269_v47 = vmul.f32 %v525_v46, %v702_v48 }
 0x177   :  { %v270_v49 = vadd.f32 %v269_v47, %v704_v50 }
 0x179   :  { %v271_v51 = vmul.f32 %v270_v49, %v235_v17  ;;  %v273_v52 = vrot.slane %v270_v49, 4 }
 0x17b   :  { %v275_v35 = vmul.f32 %v273_v52, %v270_v49 }
 0x17d   :  { %v277_v37 = vrot.slane %v275_v35, 6 }
 0x17f   :  { %v279_v53 = vadd.f32 %v277_v37, %v271_v51 }
 0x181   :  { %526 = vtanh.f32 %v279_v53 }
 0x18b   :  { %v527_v54 = vpop.eup %526 }
 0x18c   :  { %v282_v55 = vrot.slane %v527_v54, 4 }
 0x18e   :  { %v284_v56 = vmul.f32 %v282_v55, %v270_v49 }
 0x190   :  { %v288_v57 = vrot.slane %v284_v56, %v676_v21  ;;  %v292_v58 = vrot.slane %v284_v56, %v679_v22  ;;  %v294_v59 = vrot.slane %v284_v56, 6 }
 0x192   :  { %v308_v60 = vmul.f32 %v288_v57, %v696_v41  ;;  %v296_v61 = vmul.f32 %v294_v59, %v716_v19  ;;  %v310_v63 = vmul.f32 %v292_v58, %v698_v42 }
 0x194   :  { %v309_v62 = vadd.f32 %v308_v60, %v690_v38  ;;  %v298_v0 = vrot.slane %v296_v61, 1 }
 0x196   :  { %v311_v1 = vadd.f32 %v310_v63, %v309_v62  ;;  %v300_v2 = vadd.f32 %v298_v0, %v296_v61 }
 0x198   :  { %528 = vtanh.f32 %v311_v1  ;;  %v301_v3 = vadd.f32 %v300_v2, %v725_v44 }
 0x19a   :  { %v444_v5 = vrot.slane %v301_v3, 4 }
 0x19c   :  { %v462_v7 = vsel %vm461_vm3, %v460_v45, %v444_v5 }
 0x1a2   :  { %v529_v8 = vpop.eup %528 }
 0x1a3   :  { %v313_v9 = vmul.f32 %v529_v8, %v702_v48 }
 0x1a5   :  { %v314_v10 = vadd.f32 %v313_v9, %v704_v50 }
 0x1a7   :  { %v315_v11 = vmul.f32 %v314_v10, %v279_v53  ;;  %v317_v4 = vrot.slane %v314_v10, 4 }
 0x1a9   :  { %v319_v6 = vmul.f32 %v317_v4, %v314_v10 }
 0x1ab   :  { %v321_v38 = vrot.slane %v319_v6, 6 }
 0x1ad   :  { %v323_v12 = vadd.f32 %v321_v38, %v315_v11 }
 0x1af   :  { %530 = vtanh.f32 %v323_v12 }
 0x1b9   :  { %v531_v13 = vpop.eup %530 }
 0x1ba   :  { %v326_v14 = vrot.slane %v531_v13, 4 }
 0x1bc   :  { %v328_v15 = vmul.f32 %v326_v14, %v314_v10 }
 0x1be   :  { %v332_v16 = vrot.slane %v328_v15, %v676_v21  ;;  %v336_v36 = vrot.slane %v328_v15, %v679_v22  ;;  %v338_v17 = vrot.slane %v328_v15, 6 }
 0x1c0   :  { %v352_v18 = vmul.f32 %v332_v16, %v696_v41  ;;  %v340_v20 = vmul.f32 %v338_v17, %v716_v19  ;;  %v354_v24 = vmul.f32 %v336_v36, %v698_v42 }
 0x1c2   :  { %v353_v23 = vadd.f32 %v352_v18, %v692_v39  ;;  %v342_v25 = vrot.slane %v340_v20, 1 }
 0x1c4   :  { %v355_v26 = vadd.f32 %v354_v24, %v353_v23  ;;  %v344_v27 = vadd.f32 %v342_v25, %v340_v20 }
 0x1c6   :  { %532 = vtanh.f32 %v355_v26  ;;  %v345_v28 = vadd.f32 %v344_v27, %v725_v44 }
 0x1c8   :  { %v447_v29 = vrot.slane %v345_v28, 3 }
 0x1ca   :  { %v464_v30 = vsel %vm463_vm4, %v462_v7, %v447_v29 }
 0x1d0   :  { %v533_v31 = vpop.eup %532 }
 0x1d1   :  { %v357_v32 = vmul.f32 %v533_v31, %v702_v48 }
 0x1d3   :  { %v358_v33 = vadd.f32 %v357_v32, %v704_v50 }
 0x1d5   :  { %v359_v34 = vmul.f32 %v358_v33, %v323_v12  ;;  %v361_v43 = vrot.slane %v358_v33, 4 }
 0x1d7   :  { %v363_v45 = vmul.f32 %v361_v43, %v358_v33 }
 0x1d9   :  { %v365_v39 = vrot.slane %v363_v45, 6 }
 0x1db   :  { %v367_v46 = vadd.f32 %v365_v39, %v359_v34 }
 0x1dd   :  { %534 = vtanh.f32 %v367_v46 }
 0x1e7   :  { %v535_v47 = vpop.eup %534 }
 0x1e8   :  { %v370_v49 = vrot.slane %v535_v47, 4 }
 0x1ea   :  { %v372_v51 = vmul.f32 %v370_v49, %v358_v33 }
 0x1ec   :  { %v376_v52 = vrot.slane %v372_v51, %v676_v21  ;;  %v380_v35 = vrot.slane %v372_v51, %v679_v22  ;;  %v382_v37 = vrot.slane %v372_v51, 6 }
 0x1ee   :  { %v396_v53 = vmul.f32 %v376_v52, %v696_v41  ;;  %v384_v54 = vmul.f32 %v382_v37, %v716_v19  ;;  %v398_v56 = vmul.f32 %v380_v35, %v698_v42 }
 0x1f0   :  { %v397_v55 = vadd.f32 %v396_v53, %v694_v40  ;;  %v386_v57 = vrot.slane %v384_v54, 1 }
 0x1f2   :  { %v399_v58 = vadd.f32 %v398_v56, %v397_v55  ;;  %v388_v59 = vadd.f32 %v386_v57, %v384_v54 }
 0x1f4   :  { %536 = vtanh.f32 %v399_v58  ;;  %v389_v60 = vadd.f32 %v388_v59, %v725_v44 }
 0x1f6   :  { %v450_v61 = vrot.slane %v389_v60, 2 }
 0x1f8   :  { %v466_v21 = vsel %vm465_vm5, %v464_v30, %v450_v61 }
 0x1fe   :  { %v537_v62 = vpop.eup %536 }
 0x1ff   :  { %v401_v22 = vmul.f32 %v537_v62, %v702_v48 }
 0x201   :  { %v402_v41 = vadd.f32 %v401_v22, %v704_v50 }
 0x203   :  { %v405_v63 = vrot.slane %v402_v41, 4  ;;  %v403_v0 = vmul.f32 %v402_v41, %v367_v46 }
 0x205   :  { %v407_v1 = vmul.f32 %v405_v63, %v402_v41 }
 0x207   :  { %v409_v40 = vrot.slane %v407_v1, 6 }
 0x209   :  { %v411_v2 = vadd.f32 %v409_v40, %v403_v0 }
 0x20b   :  { %538 = vtanh.f32 %v411_v2  ;;  %472 = vst [vmem:[#allocation4 - $0x2] sm:$0xc] %v411_v2 }
 0x215   :  { %v539_v42 = vpop.eup %538 }
 0x216   :  { %v414_v3 = vrot.slane %v539_v42, 4 }
 0x218   :  { %v416_v5 = vmul.f32 %v414_v3, %v402_v41 }
 0x21a   :  { %v426_v7 = vrot.slane %v416_v5, 6 }
 0x21c   :  { %v428_v8 = vmul.f32 %v426_v7, %v716_v19 }
 0x21e   :  { %v430_v9 = vrot.slane %v428_v8, 1 }
 0x220   :  { %v432_v10 = vadd.f32 %v430_v9, %v428_v8 }
 0x222   :  { %v433_v11 = vadd.f32 %v432_v10, %v725_v44 }
 0x224   :  { %v453_v48 = vrot.slane %v433_v11, 1 }
 0x226   :  { %v468_v50 = vsel %vm467_vm6, %v466_v21, %v453_v48 }
 0x227   :  { %469 = vst [vmem:[#allocation10] sm:$0xff] %v468_v50 }
 0x228   :  { %595 = shalt.err (!%p592_p6)
}
 0x229   :  { %s596_s8 = scalar_lea.hbm %s792_s2, 128 }
 0x22a   :  { %p597_p7 = scmp.ne.s32.totalorder %s792_s2, %s596_s8  ;;  %p600_p8 = scmp.lt.u32.totalorder %s596_s8, %s792_s2 }
 0x22c   :  { %p602_p9 = pnand %p600_p8, %p597_p7 }
 0x22e   :  { %605 = shalt.err (!%p602_p9)
}
 0x22f   :  { %482 = dma.vmem_to_hbm [thread:$0]  %s480_s4, 128, %s792_s2, [#allocation7]  }
 0x230   :  { %610 = dma.done.wait [#allocation7], 128  }
 0x231   :  { %611 = vsyncadd [#allocation7], 4294967168 }
 0x232   :  { %486 = vsyncpa [#allocation6], 1 }
 0x233   :  { %487 = vsyncpa [#allocation9], 1 }
 0x234   :  { %488 = vsyncpa [#allocation7], 1 }

</bundles_post_ra>
